<compile_context>
chip_gen: v7x
topology: tpu7x:2x2x1
jax: 0.10.0
libtpu: 0.0.40
codegen_flags: <defaults>
</compile_context>

<pallas_src>
import jax
import jax.numpy as jnp
from jax import lax
from jax.experimental import pallas as pl
from jax.experimental.pallas import tpu as pltpu


def _round_up(x, m):
    return ((x + m - 1) // m) * m


def parametric_kernel(lam_ref, x_ref, xr_ref, w_ref, b_ref, o_ref):
    # lam_ref : SMEM f32[1]        -- the learnable scalar `weight` (lambda)
    # x_ref   : VMEM f32[TM, H]    -- full-K row tile of X (matmul LHS)
    # xr_ref  : VMEM f32[TM, TN]   -- residual slab of X (columns of this N tile)
    # w_ref   : VMEM f32[TN, H]    -- row block of the Linear weight, torch layout
    # b_ref   : VMEM f32[1, TN]    -- bias slab
    # o_ref   : VMEM f32[TM, TN]
    lam = lam_ref[0]
    # x @ w.T for this (M, N) tile: contract the last axis of both operands
    # ("NT" matmul) -> MXU, no in-kernel or HBM transpose of the weight.
    y = lax.dot_general(
        x_ref[...], w_ref[...],
        dimension_numbers=(((1,), (1,)), ((), ())),
        preferred_element_type=jnp.float32,
    ) + b_ref[...]
    xr = xr_ref[...].astype(jnp.float32)
    # lam*y + (1-lam)*x  ==  x + lam*(y - x)
    o_ref[...] = (xr + lam * (y - xr)).astype(o_ref.dtype)


def parametric_forward(lam, x, w, b, *, tm_target=256, tn_target=256):
    """out = lam * (x @ w.T + b) + (1 - lam) * x   (torch nn.Linear convention)."""
    M, H_in = x.shape
    H_out, H_in_w = w.shape
    assert H_in == H_in_w and H_out == H_in, "residual blend needs a square Linear"

    # ---- Row (M) tile: as large as possible up to tm_target, sublane aligned;
    #      pad ragged M so no rows are silently dropped.
    TM = tm_target if M >= tm_target else _round_up(M, 8)
    M_pad = _round_up(M, TM)
    x_p = x if M_pad == M else jnp.pad(x, ((0, M_pad - M), (0, 0)))

    # ---- Output-feature (N) tile: lane aligned when the hidden size allows.
    if H_out % tn_target == 0:
        TN = tn_target
    elif H_out % 128 == 0:
        TN = 128
    else:
        TN = H_out          # small / ragged hidden -> single full-width block
        # TODO(synk): for ragged large H, pad the feature dim to a 128 multiple.

    grid = (M_pad // TM, H_out // TN)
    b2 = b.reshape(1, H_out)
    lam1 = lam.reshape(1).astype(jnp.float32)

    cost = pl.CostEstimate(
        flops=2 * M_pad * H_in * H_out,
        transcendentals=0,
        bytes_accessed=(x_p.size + w.size + b.size + M_pad * H_out) * 4,
    )

    out = pl.pallas_call(
        parametric_kernel,
        out_shape=jax.ShapeDtypeStruct((M_pad, H_out), x.dtype),
        grid=grid,
        in_specs=[
            pl.BlockSpec(memory_space=pltpu.MemorySpace.SMEM),   # lambda scalar
            pl.BlockSpec((TM, H_in), lambda i, j: (i, 0)),       # X rows (matmul LHS)
            pl.BlockSpec((TM, TN),   lambda i, j: (i, j)),       # X residual slab
            pl.BlockSpec((TN, H_in), lambda i, j: (j, 0)),       # weight row block
            pl.BlockSpec((1, TN),    lambda i, j: (0, j)),       # bias slab
        ],
        out_specs=pl.BlockSpec((TM, TN), lambda i, j: (i, j)),
        compiler_params=pltpu.CompilerParams(
            dimension_semantics=("parallel", "parallel"),
            vmem_limit_bytes=48 << 20,     # fits v5e/v6e/v7x; tiles capped at 256
        ),
        cost_estimate=cost,
    )(lam1, x_p, x_p, w, b2)

    return out if M_pad == M else out[:M]


if __name__ == "__main__":
    batch, seq, hidden = 2, 8, 32

    key = jax.random.PRNGKey(0)
    kx, kw, kb = jax.random.split(key, 3)

    # Deterministic synthetic parameters (shapes from nn.Linear(hidden, hidden)).
    w = jax.random.normal(kw, (hidden, hidden), dtype=jnp.float32) * 0.1
    b = jax.random.normal(kb, (hidden,), dtype=jnp.float32) * 0.1

    # ParametricModule.__init__ sets weight = [0.0]; also test a non-trivial blend.
    lam_init = jnp.array([0.0], dtype=jnp.float32)
    lam_other = jnp.array([0.3], dtype=jnp.float32)

    # Aligned M and a ragged M (exercises the pad/slice tail handling).
    for M in (batch * seq, batch * seq + 4):
        x = jax.random.normal(kx, (M, hidden), dtype=jnp.float32)
        for lam in (lam_init, lam_other):
            out = jax.block_until_ready(parametric_forward(lam, x, w, b))
            ref = lam[0] * (x @ w.T + b) + (1.0 - lam[0]) * x
            assert out.shape == x.shape and out.dtype == x.dtype
            assert jnp.allclose(out, ref, atol=1e-5, rtol=1e-5), "mismatch vs reference"

    print("KERNEL_OK")
</pallas_src>

<mosaic_0001>
module attributes {stable_mosaic.version = 11 : i64} {
  func.func @parametric_kernel(%arg0: i32, %arg1: i32, %arg2: memref<1xf32, #tpu.memory_space<smem>>, %arg3: memref<16x32xf32, #tpu.memory_space<vmem>>, %arg4: memref<16x32xf32, #tpu.memory_space<vmem>>, %arg5: memref<32x32xf32, #tpu.memory_space<vmem>>, %arg6: memref<1x32xf32, #tpu.memory_space<vmem>>, %arg7: memref<16x32xf32, #tpu.memory_space<vmem>>) attributes {dimension_semantics = [#tpu.dimension_semantics<parallel>, #tpu.dimension_semantics<parallel>], iteration_bounds = array<i64: 1, 1>, scalar_prefetch = 0 : i64, scratch_operands = 0 : i64, tpu.core_type = #tpu.core_type<tc>, window_params = [{transform_indices = @transform_0, window_bounds = array<i64: 1>}, {transform_indices = @transform_1, window_bounds = array<i64: 16, 32>}, {transform_indices = @transform_2, window_bounds = array<i64: 16, 32>}, {transform_indices = @transform_3, window_bounds = array<i64: 32, 32>}, {transform_indices = @transform_4, window_bounds = array<i64: 1, 32>}, {transform_indices = @transform_5, window_bounds = array<i64: 16, 32>}]} {
    %c0 = arith.constant 0 : index
    %0 = memref.load %arg2[%c0] : memref<1xf32, #tpu.memory_space<smem>>
    %c0_0 = arith.constant 0 : index
    %c0_1 = arith.constant 0 : index
    %1 = vector.load %arg3[%c0_0, %c0_1] : memref<16x32xf32, #tpu.memory_space<vmem>>, vector<16x32xf32>
    %c0_2 = arith.constant 0 : index
    %c0_3 = arith.constant 0 : index
    %2 = vector.load %arg5[%c0_2, %c0_3] : memref<32x32xf32, #tpu.memory_space<vmem>>, vector<32x32xf32>
    %cst = arith.constant dense<0.000000e+00> : vector<16x32xf32>
    %3 = tpu.matmul %1, %2, %cst {dimension_numbers = #tpu.dot_dimension_numbers<[1], [1], [0], [0], [0, 0, 1, 0], [], []>} : vector<16x32xf32>, vector<32x32xf32>, vector<16x32xf32> -> vector<16x32xf32>
    %c0_4 = arith.constant 0 : index
    %c0_5 = arith.constant 0 : index
    %4 = vector.load %arg6[%c0_4, %c0_5] : memref<1x32xf32, #tpu.memory_space<vmem>>, vector<1x32xf32>
    %5 = vector.broadcast %4 : vector<1x32xf32> to vector<16x32xf32>
    %6 = arith.addf %3, %5 : vector<16x32xf32>
    %c0_6 = arith.constant 0 : index
    %c0_7 = arith.constant 0 : index
    %7 = vector.load %arg4[%c0_6, %c0_7] : memref<16x32xf32, #tpu.memory_space<vmem>>, vector<16x32xf32>
    %8 = arith.subf %6, %7 : vector<16x32xf32>
    %9 = vector.broadcast %0 : f32 to vector<16x32xf32>
    %10 = arith.mulf %9, %8 : vector<16x32xf32>
    %11 = arith.addf %7, %10 : vector<16x32xf32>
    %c0_8 = arith.constant 0 : index
    %c0_9 = arith.constant 0 : index
    %12 = vector.load %arg7[%c0_8, %c0_9] : memref<16x32xf32, #tpu.memory_space<vmem>>, vector<16x32xf32>
    tpu.vector_store %arg7[%c0_8, %c0_9], %11 {strides = array<i32>} : memref<16x32xf32, #tpu.memory_space<vmem>>, vector<16x32xf32>,
    return
  }
  func.func @transform_0(%arg0: i32, %arg1: i32) -> i32 {
    %c0_i32 = arith.constant 0 : i32
    %c0_i32_0 = arith.constant 0 : i32
    return %c0_i32 : i32
  }
  func.func @transform_1(%arg0: i32, %arg1: i32) -> (i32, i32) {
    %c0_i32 = arith.constant 0 : i32
    %c0_i32_0 = arith.constant 0 : i32
    return %arg0, %c0_i32 : i32, i32
  }
  func.func @transform_2(%arg0: i32, %arg1: i32) -> (i32, i32) {
    %c0_i32 = arith.constant 0 : i32
    return %arg0, %arg1 : i32, i32
  }
  func.func @transform_3(%arg0: i32, %arg1: i32) -> (i32, i32) {
    %c0_i32 = arith.constant 0 : i32
    %c0_i32_0 = arith.constant 0 : i32
    return %arg1, %c0_i32 : i32, i32
  }
  func.func @transform_4(%arg0: i32, %arg1: i32) -> (i32, i32) {
    %c0_i32 = arith.constant 0 : i32
    %c0_i32_0 = arith.constant 0 : i32
    return %c0_i32, %arg1 : i32, i32
  }
  func.func @transform_5(%arg0: i32, %arg1: i32) -> (i32, i32) {
    %c0_i32 = arith.constant 0 : i32
    return %arg0, %arg1 : i32, i32
  }
}

</mosaic_0001>

<bundles_post_ra>
// kernel: tpu_custom_call.1
= control target key start
LH: loop header
LB: loop body
LE: loop exit
PB: predicated region body
PF: predicated region fallthrough
CT: control target
= control target key end

     0   :  { %11 = vsyncpa [#allocation4], 0  ;;  %s451_s0 = inlined_call_operand.<no memory space> [shape: f32[1], index: 0, kind: input, shape index: {}]   ;;  %s452_s1 = inlined_call_operand.hbm [shape: f32[16,32], index: 1, kind: input, shape index: {}]   ;;  %s453_s2 = inlined_call_operand.hbm [shape: f32[16,32], index: 2, kind: input, shape index: {}]   ;;  %s454_s3 = inlined_call_operand.hbm [shape: f32[32,32], index: 3, kind: input, shape index: {}]   ;;  %s455_s4 = inlined_call_operand.vmem [shape: f32[1,32], index: 4, kind: input, shape index: {}]   ;;  %s456_s5 = inlined_call_operand.hbm [shape: f32[16,32], index: 5, kind: output, shape index: {}]  }
   0x1   :  { %12 = vsyncpa [#allocation7], 0 }
   0x2   :  { %13 = vsyncpa [#allocation5], 0  ;;  %s336_s18 = smov [#allocation6]   ;;  %s337_s20 = smov [#allocation3]  }
   0x3   :  { %s33_s19 = sshll.u32 %s336_s18, 4  ;;  %s21_s21 = sshll.u32 %s337_s20, 4  ;;  %s34_s19 = int_to_ptr.vmem [resolvable:$true] %s33_s19  ;;  %s372_s21 = int_to_ptr.vmem [resolvable:$true] %s21_s21 }
   0x4   :  { %s242_s24 = scalar_lea.hbm %s453_s2, 256 }
   0x5   :  { %p243_p0 = scmp.ne.s32.totalorder %s453_s2, %s242_s24  ;;  %p246_p1 = scmp.lt.u32.totalorder %s242_s24, %s453_s2 }
   0x7   :  { %p248_p2 = pnand %p246_p1, %p243_p0 }
   0x9   :  { %251 = shalt.err (!%p248_p2)
}
   0xa   :  { %s252_s29 = scalar_lea.vmem %s34_s19, 256  ;;  %p257_p4 = scmp.lt.s32.totalorder %s34_s19, %s34_s19 }
   0xb   :  { %p253_p3 = scmp.ne.s32.totalorder %s34_s19, %s252_s29  ;;  %p258_p5 = scmp.lt.s32.totalorder %s252_s29, %s252_s29 }
   0xd   :  { %p259_p6 = por %p258_p5, %p257_p4 }
   0xf   :  { %p260_p7 = pnand %p259_p6, %p253_p3 }
  0x11   :  { %263 = shalt.err (!%p260_p7)
}
  0x12   :  { %s338_s30 = smov 128   ;;  %s339_s6 = smov 8  }
  0x13   :  { %39 = dma.hbm_to_vmem [thread:$0]  %s453_s2, 256, %s34_s19, [#allocation7], %s338_s30, %s338_s30, %s339_s6  }
  0x14   :  { %s264_s11 = scalar_lea.hbm %s452_s1, 256 }
  0x15   :  { %p265_p8 = scmp.ne.s32.totalorder %s452_s1, %s264_s11  ;;  %p268_p9 = scmp.lt.u32.totalorder %s264_s11, %s452_s1 }
  0x17   :  { %p270_p10 = pnand %p268_p9, %p265_p8 }
  0x19   :  { %273 = shalt.err (!%p270_p10)
}
  0x1a   :  { %s274_s16 = scalar_lea.vmem %s372_s21, 256  ;;  %p279_p12 = scmp.lt.s32.totalorder %s372_s21, %s372_s21 }
  0x1b   :  { %p275_p11 = scmp.ne.s32.totalorder %s372_s21, %s274_s16  ;;  %p280_p13 = scmp.lt.s32.totalorder %s274_s16, %s274_s16 }
  0x1d   :  { %p281_p0 = por %p280_p13, %p279_p12 }
  0x1f   :  { %p282_p1 = pnand %p281_p0, %p275_p11 }
  0x21   :  { %285 = shalt.err (!%p282_p1)
}
  0x22   :  { %27 = dma.hbm_to_vmem [thread:$0]  %s452_s1, 256, %s372_s21, [#allocation4], %s338_s30, %s338_s30, %s339_s6  }
  0x23   :  { %s340_s18 = smov [#allocation8]   ;;  %s286_s23 = scalar_lea.hbm %s454_s3, 512 }
  0x24   :  { %s45_s19 = sshll.u32 %s340_s18, 4  ;;  %p287_p2 = scmp.ne.s32.totalorder %s454_s3, %s286_s23  ;;  %s46_s19 = int_to_ptr.vmem [resolvable:$true] %s45_s19 }
  0x25   :  { %p290_p3 = scmp.lt.u32.totalorder %s286_s23, %s454_s3 }
  0x27   :  { %p292_p4 = pnand %p290_p3, %p287_p2 }
  0x29   :  { %295 = shalt.err (!%p292_p4)
}
  0x2a   :  { %s296_s28 = scalar_lea.vmem %s46_s19, 512  ;;  %p301_p6 = scmp.lt.s32.totalorder %s46_s19, %s46_s19 }
  0x2b   :  { %p297_p5 = scmp.ne.s32.totalorder %s46_s19, %s296_s28  ;;  %p302_p7 = scmp.lt.s32.totalorder %s296_s28, %s296_s28 }
  0x2d   :  { %p303_p8 = por %p302_p7, %p301_p6 }
  0x2f   :  { %p304_p9 = pnand %p303_p8, %p297_p5 }
  0x31   :  { %307 = shalt.err (!%p304_p9)
}
  0x32   :  { %51 = dma.hbm_to_vmem [thread:$0]  %s454_s3, 512, %s46_s19, [#allocation7], %s338_s30, %s338_s30, %s339_s6  }
  0x33   :  { %330 = dma.done.wait [#allocation4], 256  }
  0x34   :  { %331 = vsyncadd [#allocation4], 4294967040 }
  0x35   :  { %332 = dma.done.wait [#allocation7], 768  }
  0x36   :  { %333 = vsyncadd [#allocation7], 4294966528  ;;  %vm77_vm0 = vcmask 261120   ;;  %v66_v0 = vld [vmem:[#allocation8] sm:$0xff]  ;;  %v67_v1 = vld [vmem:[#allocation8 + $0x8] sm:$0xff]  ;;  %v175_v14 = vstv %s451_s0  ;;  %s341_s9 = smov [#allocation9]  }
  0x37   :  { %vm225_vm1 = vmpackc.low %vm77_vm0, %vm77_vm0  ;;  %v68_v2 = vld [vmem:[#allocation8 + $0x10] sm:$0xff]  ;;  %v224_v3 = vpack.c.bf16 %v67_v1, %v66_v0  ;;  %v69_v4 = vld [vmem:[#allocation8 + $0x18] sm:$0xff]  ;;  %s187_s10 = sshll.u32 %s341_s9, 4  ;;  %s188_s10 = int_to_ptr.vmem [resolvable:$true] %s187_s10 }
  0x38   :  { %v64_v5 = vld [vmem:[#allocation3] sm:$0xff]  ;;  %v230_v6 = vpack.c.bf16 %v69_v4, %v68_v2  ;;  %v65_v7 = vld [vmem:[#allocation3 + $0x8] sm:$0xff]  ;;  %v172_v10 = vld [vmem:[#allocation6 + $0x8] sm:$0xff]  ;;  %p313_p11 = scmp.lt.s32.totalorder %s188_s10, %s188_s10 }
  0x39   :  { %221 = vmatprep.mubr.msk.f32.mxu0 %vm77_vm0, %v64_v5  ;;  %226 = vmatprep.subr.msk.bf16.mxu0 %vm225_vm1, %v224_v3  ;;  %v200_v8 = vld [vmem:[%s455_s4] ss:$0 sm:$0xff]  ;;  %v171_v13 = vld [vmem:[#allocation6] sm:$0xff]  ;;  %s308_s4 = scalar_lea.vmem %s188_s10, 256 }
  0x3a   :  { %229 = vmatpush3.bf16.xpose.msk.msra.mxu0 %vm225_vm1, %v224_v3  ;;  %p309_p10 = scmp.ne.s32.totalorder %s188_s10, %s308_s4  ;;  %p314_p12 = scmp.lt.s32.totalorder %s308_s4, %s308_s4 }
  0x3b   :  { %232 = vmatprep.subr.msk.bf16.mxu0 %vm225_vm1, %v230_v6 }
  0x3c   :  { %p315_p13 = por %p314_p12, %p313_p11 }
  0x3e   :  { %p316_p0 = pnand %p315_p13, %p309_p10 }
  0x42   :  { %235 = vmatpush3.bf16.xpose.msk.msra.mxu0 %vm225_vm1, %v230_v6 }
  0x49   :  { %222 = vmatmul.mubr.msk.f32.vlgmr.msra.gmra.mrb[0].mxu0 %vm77_vm0, %v65_v7 }
 0x11c   :  { %v223_v9 = vpop.f32.mrb[0].mxu0 }
 0x11d   :  { %v168_v11 = vadd.f32 %v223_v9, %v200_v8  ;;  %v162_v12 = vpop.f32.mrb[1].mxu0 }
 0x11e   :  { %v163_v15 = vadd.f32 %v200_v8, %v162_v12 }
 0x11f   :  { %v174_v16 = vsub.f32 %v168_v11, %v172_v10 }
 0x120   :  { %v173_v17 = vsub.f32 %v163_v15, %v171_v13 }
 0x121   :  { %v177_v18 = vmul.f32 %v175_v14, %v174_v16 }
 0x122   :  { %v176_v19 = vmul.f32 %v175_v14, %v173_v17 }
 0x123   :  { %v179_v20 = vadd.f32 %v177_v18, %v172_v10 }
 0x124   :  { %v178_v21 = vadd.f32 %v176_v19, %v171_v13 }
 0x125   :  { %181 = vst.msk [vmem:[#allocation9 + $0x8] sm:$0xff] %vm77_vm0, %v179_v20 }
 0x126   :  { %180 = vst.msk [vmem:[#allocation9] sm:$0xff] %vm77_vm0, %v178_v21 }
 0x127   :  { %319 = shalt.err (!%p316_p0)
}
 0x128   :  { %s320_s12 = scalar_lea.hbm %s456_s5, 256 }
 0x129   :  { %p321_p1 = scmp.ne.s32.totalorder %s456_s5, %s320_s12  ;;  %p324_p2 = scmp.lt.u32.totalorder %s320_s12, %s456_s5 }
 0x12b   :  { %p326_p3 = pnand %p324_p2, %p321_p1 }
 0x12d   :  { %329 = shalt.err (!%p326_p3)
}
 0x12e   :  { %193 = dma.vmem_to_hbm [thread:$0]  %s188_s10, 256, %s456_s5, [#allocation5], %s338_s30, %s338_s30, %s339_s6  }
 0x12f   :  { %334 = dma.done.wait [#allocation5], 256  }
 0x130   :  { %335 = vsyncadd [#allocation5], 4294967040 }
 0x131   :  { %197 = vsyncpa [#allocation4], 1 }
 0x132   :  { %198 = vsyncpa [#allocation7], 1 }
 0x133   :  { %199 = vsyncpa [#allocation5], 1 }

</bundles_post_ra>
